<compile_context>
chip_gen: v5e
topology: v5e:2x2
jax: 0.10.0
libtpu: 0.0.40
codegen_flags: <defaults>
</compile_context>

<pallas_src>
import functools

import numpy as np
import jax
import jax.numpy as jnp
from jax.experimental import pallas as pl
from jax.experimental.pallas import tpu as pltpu

LANES = 128


def _round_up(x, m):
    return ((x + m - 1) // m) * m


def _bb_kernel(m_ref, sig_ref, w_ref, tb_ref,          # scalar prefetch (SMEM)
               x0_ref, y_ref, noise_ref,                # VMEM tiles: (1, c, RT, 128)
               x0r_ref, loss_ref,                       # out: (1, c, RT, 128), (1,1,1,128)
               *, c, row_tile, s_valid, needs_mask):
    i = pl.program_id(0)          # batch element
    j = pl.program_id(1)          # row tile
    n_j = pl.num_programs(1)

    m = m_ref[i]                  # scalar m_t for this batch element
    sig = sig_ref[i]              # scalar sigma_t for this batch element

    # Native-dtype loads, f32 math in vregs.
    x0 = x0_ref[0].astype(jnp.float32)       # (c, RT, 128)
    y = y_ref[0].astype(jnp.float32)
    noise = noise_ref[0].astype(jnp.float32)

    # ---- q_sample (objective == 'grad') -------------------------------------
    objective = m * (y - x0) + sig * noise   # (c, RT, 128)
    x_t = x0 + objective                     # == (1-m)*x0 + m*y + sigma*noise

    # ---- surrogate denoise_fn: unrolled VPU channel mix + time bias ----------
    # Weights / per-sample bias are scalars in SMEM.  Each channel slice x_t[k]
    # is a dense (RT, 128) slab -> plain scalar*(RT,128) FMAs, no sublane shuffles.
    # NOTE: for large c (>= ~64) this should switch to an MXU jnp.dot path.
    dd_sum = None
    for o in range(c):
        row = w_ref[o * c] * x_t[0]
        for k in range(1, c):
            row = row + w_ref[o * c + k] * x_t[k]
        row = row + tb_ref[i * c + o]                       # objective_recon[:, o]
        # predict_x0_from_objective (objective == 'grad'); direct dense store.
        x0r_ref[0, o] = (x_t[o] - row).astype(x0r_ref.dtype)
        d = objective[o] - row
        dd = d * d
        dd_sum = dd if dd_sum is None else dd_sum + dd      # (RT, 128)

    # ---- l2 loss: per-(batch, tile) lane partial ------------------------------
    def _write_loss(vals):
        loss_ref[0, 0] = jnp.sum(vals, axis=0, keepdims=True)   # (1, 128)

    if needs_mask:  # static: mask garbage rows / padded lanes only on the tail tile
        is_tail = j == n_j - 1

        @pl.when(is_tail)
        def _():
            rows = jax.lax.broadcasted_iota(jnp.int32, (row_tile, LANES), 0)
            lanes = jax.lax.broadcasted_iota(jnp.int32, (row_tile, LANES), 1)
            flat = (j * row_tile + rows) * LANES + lanes
            _write_loss(jnp.where(flat < s_valid, dd_sum, 0.0))

        @pl.when(jnp.logical_not(is_tail))
        def _():
            _write_loss(dd_sum)
    else:
        _write_loss(dd_sum)


def brownian_bridge_forward(x, y, t, noise, m_sched, var_sched, conv_w, time_bias,
                            *, row_tile_max=512):
    """Returns (recloss, x0_recon) matching BrownianBridgeModel_c2v.p_losses
    (objective='grad', loss_type='l2') with the surrogate denoiser."""
    b, c, h, wsp, l = x.shape
    S = h * wsp * l
    assert c <= 8, "unrolled VPU channel mix assumes small c; use an MXU path otherwise"

    # Sublane/lane-dense view of the flattened spatial axis: (b, c, R, 128).
    S128 = _round_up(S, LANES)
    R = S128 // LANES

    x0f = x.reshape(b, c, S)
    yf = y.reshape(b, c, S)
    nf = noise.reshape(b, c, S)
    if S128 != S:
        # Odd-S volumes only: pad to the next lane multiple (one extra pass per
        # input).  Divisible volumes (the common case) take the zero-copy view path.
        pad = ((0, 0), (0, 0), (0, S128 - S))
        x0f = jnp.pad(x0f, pad)
        yf = jnp.pad(yf, pad)
        nf = jnp.pad(nf, pad)
    x0f = x0f.reshape(b, c, R, LANES)
    yf = yf.reshape(b, c, R, LANES)
    nf = nf.reshape(b, c, R, LANES)

    # Row tiling: ROW_TILE % 8 == 0 (sublane-dense), or exactly R for small volumes.
    row_tile_max = max(8, _round_up(int(row_tile_max), 8))
    if R <= row_tile_max:
        row_tile, n_tiles = R, 1
    else:
        row_tile = row_tile_max
        n_tiles = -(-R // row_tile)            # ragged last block handled by Pallas

    needs_mask = (n_tiles * row_tile * LANES) != S

    # extract(self.m_t, t, shape) / sqrt(extract(self.variance_t, t, shape))
    m_t = m_sched[t].astype(jnp.float32)                      # (b,)
    sigma_t = jnp.sqrt(var_sched[t]).astype(jnp.float32)      # (b,)
    w_flat = conv_w.reshape(-1).astype(jnp.float32)           # (c*c,)  -> SMEM
    tb_flat = time_bias.reshape(-1).astype(jnp.float32)       # (b*c,)  -> SMEM

    kernel = functools.partial(_bb_kernel, c=c, row_tile=row_tile,
                               s_valid=S, needs_mask=needs_mask)

    itemsize = jnp.dtype(x.dtype).itemsize
    io_block = c * row_tile * LANES * itemsize                # one input/output block
    f32_block = c * row_tile * LANES * 4
    # 2x(3 in + 1 out) pipeline buffers + allowance for compiler-managed f32
    # intermediates (x_t, objective, per-channel temporaries).
    vmem_limit = 2 * 4 * io_block + 12 * f32_block + (4 << 20)
    vmem_limit = int(min(max(vmem_limit, 32 << 20), 48 << 20))

    cost = pl.CostEstimate(
        flops=int((10 + 2 * c) * b * c * S),
        transcendentals=0,
        bytes_accessed=int(4 * b * c * S * itemsize),
    )

    x0r4, loss_parts = pl.pallas_call(
        kernel,
        out_shape=(
            jax.ShapeDtypeStruct((b, c, R, LANES), x.dtype),
            jax.ShapeDtypeStruct((b, n_tiles, 1, LANES), jnp.float32),
        ),
        grid_spec=pltpu.PrefetchScalarGridSpec(
            num_scalar_prefetch=4,                 # m_t, sigma_t, conv_w, time_bias
            grid=(b, n_tiles),
            in_specs=[
                pl.BlockSpec((1, c, row_tile, LANES), lambda i, j, *_: (i, 0, j, 0)),  # x0
                pl.BlockSpec((1, c, row_tile, LANES), lambda i, j, *_: (i, 0, j, 0)),  # y
                pl.BlockSpec((1, c, row_tile, LANES), lambda i, j, *_: (i, 0, j, 0)),  # noise
            ],
            out_specs=[
                pl.BlockSpec((1, c, row_tile, LANES), lambda i, j, *_: (i, 0, j, 0)),  # x0_recon
                pl.BlockSpec((1, 1, 1, LANES), lambda i, j, *_: (i, j, 0, 0)),         # loss part
            ],
        ),
        compiler_params=pltpu.CompilerParams(
            dimension_semantics=("parallel", "parallel"),
            vmem_limit_bytes=vmem_limit),
        cost_estimate=cost,
    )(m_t, sigma_t, w_flat, tb_flat, x0f, yf, nf)

    recloss = jnp.sum(loss_parts) / float(b * c * S)
    x0_recon = x0r4.reshape(b, c, S128)
    if S128 != S:
        x0_recon = x0_recon[:, :, :S]
    return recloss, x0_recon.reshape(b, c, h, wsp, l)


def make_schedule(num_timesteps, max_var=1.0):
    # register_schedule with mt_type == 'linear'
    m_t = np.linspace(0.001, 0.999, num_timesteps)
    variance_t = 2.0 * (m_t - m_t ** 2) * max_var
    return jnp.asarray(m_t, jnp.float32), jnp.asarray(variance_t, jnp.float32)


def _reference(x, y, t, noise, m_sched, var_sched, conv_w, time_bias):
    b, c = x.shape[:2]
    m_b = m_sched[t].reshape(b, 1, 1, 1, 1).astype(jnp.float32)
    s_b = jnp.sqrt(var_sched[t]).reshape(b, 1, 1, 1, 1).astype(jnp.float32)
    xf = x.astype(jnp.float32)
    yf = y.astype(jnp.float32)
    nf = noise.astype(jnp.float32)
    x_t = (1.0 - m_b) * xf + m_b * yf + s_b * nf
    obj = m_b * (yf - xf) + s_b * nf
    xt_flat = x_t.reshape(b, c, -1)
    rec = jnp.einsum("oc,bcs->bos", conv_w, xt_flat) + time_bias.reshape(b, c, 1)
    x0r = (xt_flat - rec).reshape(x.shape)
    loss = jnp.mean((obj.reshape(b, c, -1) - rec) ** 2)
    return loss, x0r


if __name__ == "__main__":
    num_timesteps = 1000
    m_sched, var_sched = make_schedule(num_timesteps)

    def run_case(key, b, c, h, w, l, row_tile_max=512):
        k_x, k_y, k_n, k_t, k_w, k_b = jax.random.split(key, 6)
        x = jax.random.normal(k_x, (b, c, h, w, l), jnp.float32)
        y = jax.random.normal(k_y, (b, c, h, w, l), jnp.float32)
        noise = jax.random.normal(k_n, (b, c, h, w, l), jnp.float32)
        t = jax.random.randint(k_t, (b,), 0, num_timesteps)

        # forward(): context = y (condition_key != 'nocond'); unused by the surrogate.
        context = y  # noqa: F841  (semantic parity with the reference forward)

        # deterministic surrogate denoise_fn parameters
        conv_w = 0.1 * jax.random.normal(k_w, (c, c), jnp.float32)
        ch_bias = 0.01 * jax.random.normal(k_b, (c,), jnp.float32)
        t_norm = t.astype(jnp.float32) / float(num_timesteps)
        freqs = jnp.arange(1, c + 1, dtype=jnp.float32)
        time_bias = 0.1 * jnp.sin(t_norm[:, None] * freqs[None, :]) + ch_bias[None, :]  # (b, c)

        recloss, x0_recon = brownian_bridge_forward(
            x, y, t, noise, m_sched, var_sched, conv_w, time_bias,
            row_tile_max=row_tile_max)
        jax.block_until_ready((recloss, x0_recon))

        assert x0_recon.shape == (b, c, h, w, l)
        assert recloss.shape == ()
        assert bool(jnp.isfinite(recloss))

        loss_ref, x0r_ref = _reference(x, y, t, noise, m_sched, var_sched,
                                       conv_w, time_bias)
        assert bool(jnp.allclose(recloss, loss_ref, atol=1e-4, rtol=1e-4))
        assert bool(jnp.allclose(x0_recon, x0r_ref, atol=1e-4, rtol=1e-4))

    key = jax.random.PRNGKey(0)
    k1, k2, k3 = jax.random.split(key, 3)
    # S = 16^3 = 4096 -> 32 lane-rows, single dense tile per batch element
    run_case(k1, b=2, c=4, h=16, w=16, l=16)
    # odd spatial dims: S = 5*5*5 = 125 -> padded to one 128-lane row, tail-masked loss
    run_case(k2, b=2, c=4, h=5, w=5, l=5)
    # multi-tile + ragged last row-tile: S = 16*16*48 = 12288 -> 96 rows, tiles of 64
    run_case(k3, b=2, c=4, h=16, w=16, l=48, row_tile_max=64)

    print("KERNEL_OK")
</pallas_src>

<mosaic_0001>
module attributes {stable_mosaic.version = 11 : i64} {
  func.func @_bb_kernel(%arg0: i32, %arg1: i32, %arg2: memref<2xf32, #tpu.memory_space<smem>>, %arg3: memref<2xf32, #tpu.memory_space<smem>>, %arg4: memref<16xf32, #tpu.memory_space<smem>>, %arg5: memref<8xf32, #tpu.memory_space<smem>>, %arg6: memref<1x4x32x128xf32, #tpu.memory_space<vmem>>, %arg7: memref<1x4x32x128xf32, #tpu.memory_space<vmem>>, %arg8: memref<1x4x32x128xf32, #tpu.memory_space<vmem>>, %arg9: memref<1x4x32x128xf32, #tpu.memory_space<vmem>>, %arg10: memref<1x1x1x128xf32, #tpu.memory_space<vmem>>) attributes {dimension_semantics = [#tpu.dimension_semantics<parallel>, #tpu.dimension_semantics<parallel>], iteration_bounds = array<i64: 2, 1>, scalar_prefetch = 4 : i64, scratch_operands = 0 : i64, tpu.core_type = #tpu.core_type<tc>, window_params = [{transform_indices = @transform_0, window_bounds = array<i64: 1, 4, 32, 128>}, {transform_indices = @transform_1, window_bounds = array<i64: 1, 4, 32, 128>}, {transform_indices = @transform_2, window_bounds = array<i64: 1, 4, 32, 128>}, {transform_indices = @transform_3, window_bounds = array<i64: 1, 4, 32, 128>}, {transform_indices = @transform_4, window_bounds = array<i64: 1, 1, 1, 128>}]} {
    %0 = arith.index_cast %arg0 : i32 to index
    %1 = memref.load %arg2[%0] : memref<2xf32, #tpu.memory_space<smem>>
    %2 = arith.index_cast %arg0 : i32 to index
    %3 = memref.load %arg3[%2] : memref<2xf32, #tpu.memory_space<smem>>
    %c0 = arith.constant 0 : index
    %c0_0 = arith.constant 0 : index
    %c0_1 = arith.constant 0 : index
    %c0_2 = arith.constant 0 : index
    %4 = vector.load %arg6[%c0, %c0_0, %c0_1, %c0_2] : memref<1x4x32x128xf32, #tpu.memory_space<vmem>>, vector<1x4x32x128xf32>
    %5 = vector.shape_cast %4 : vector<1x4x32x128xf32> to vector<4x32x128xf32>
    %c0_3 = arith.constant 0 : index
    %c0_4 = arith.constant 0 : index
    %c0_5 = arith.constant 0 : index
    %c0_6 = arith.constant 0 : index
    %6 = vector.load %arg7[%c0_3, %c0_4, %c0_5, %c0_6] : memref<1x4x32x128xf32, #tpu.memory_space<vmem>>, vector<1x4x32x128xf32>
    %7 = vector.shape_cast %6 : vector<1x4x32x128xf32> to vector<4x32x128xf32>
    %c0_7 = arith.constant 0 : index
    %c0_8 = arith.constant 0 : index
    %c0_9 = arith.constant 0 : index
    %c0_10 = arith.constant 0 : index
    %8 = vector.load %arg8[%c0_7, %c0_8, %c0_9, %c0_10] : memref<1x4x32x128xf32, #tpu.memory_space<vmem>>, vector<1x4x32x128xf32>
    %9 = vector.shape_cast %8 : vector<1x4x32x128xf32> to vector<4x32x128xf32>
    %10 = arith.subf %7, %5 : vector<4x32x128xf32>
    %11 = vector.broadcast %1 : f32 to vector<4x32x128xf32>
    %12 = arith.mulf %11, %10 : vector<4x32x128xf32>
    %13 = vector.broadcast %3 : f32 to vector<4x32x128xf32>
    %14 = arith.mulf %13, %9 : vector<4x32x128xf32>
    %15 = arith.addf %12, %14 : vector<4x32x128xf32>
    %16 = arith.addf %5, %15 : vector<4x32x128xf32>
    %c0_11 = arith.constant 0 : index
    %17 = memref.load %arg4[%c0_11] : memref<16xf32, #tpu.memory_space<smem>>
    %18 = vector.extract_strided_slice %16 {offsets = [0, 0, 0], sizes = [1, 32, 128], strides = [1, 1, 1]} : vector<4x32x128xf32> to vector<1x32x128xf32>
    %19 = vector.shape_cast %18 : vector<1x32x128xf32> to vector<32x128xf32>
    %20 = vector.broadcast %17 : f32 to vector<32x128xf32>
    %21 = arith.mulf %20, %19 : vector<32x128xf32>
    %c1 = arith.constant 1 : index
    %22 = memref.load %arg4[%c1] : memref<16xf32, #tpu.memory_space<smem>>
    %23 = vector.extract_strided_slice %16 {offsets = [1, 0, 0], sizes = [1, 32, 128], strides = [1, 1, 1]} : vector<4x32x128xf32> to vector<1x32x128xf32>
    %24 = vector.shape_cast %23 : vector<1x32x128xf32> to vector<32x128xf32>
    %25 = vector.broadcast %22 : f32 to vector<32x128xf32>
    %26 = arith.mulf %25, %24 : vector<32x128xf32>
    %27 = arith.addf %21, %26 : vector<32x128xf32>
    %c2 = arith.constant 2 : index
    %28 = memref.load %arg4[%c2] : memref<16xf32, #tpu.memory_space<smem>>
    %29 = vector.extract_strided_slice %16 {offsets = [2, 0, 0], sizes = [1, 32, 128], strides = [1, 1, 1]} : vector<4x32x128xf32> to vector<1x32x128xf32>
    %30 = vector.shape_cast %29 : vector<1x32x128xf32> to vector<32x128xf32>
    %31 = vector.broadcast %28 : f32 to vector<32x128xf32>
    %32 = arith.mulf %31, %30 : vector<32x128xf32>
    %33 = arith.addf %27, %32 : vector<32x128xf32>
    %c3 = arith.constant 3 : index
    %34 = memref.load %arg4[%c3] : memref<16xf32, #tpu.memory_space<smem>>
    %35 = vector.extract_strided_slice %16 {offsets = [3, 0, 0], sizes = [1, 32, 128], strides = [1, 1, 1]} : vector<4x32x128xf32> to vector<1x32x128xf32>
    %36 = vector.shape_cast %35 : vector<1x32x128xf32> to vector<32x128xf32>
    %37 = vector.broadcast %34 : f32 to vector<32x128xf32>
    %38 = arith.mulf %37, %36 : vector<32x128xf32>
    %39 = arith.addf %33, %38 : vector<32x128xf32>
    %c4_i32 = arith.constant 4 : i32
    %40 = arith.muli %arg0, %c4_i32 : i32
    %c0_i32 = arith.constant 0 : i32
    %41 = arith.addi %40, %c0_i32 : i32
    %42 = arith.index_cast %41 : i32 to index
    %43 = memref.load %arg5[%42] : memref<8xf32, #tpu.memory_space<smem>>
    %44 = vector.broadcast %43 : f32 to vector<32x128xf32>
    %45 = arith.addf %39, %44 : vector<32x128xf32>
    %46 = vector.extract_strided_slice %16 {offsets = [0, 0, 0], sizes = [1, 32, 128], strides = [1, 1, 1]} : vector<4x32x128xf32> to vector<1x32x128xf32>
    %47 = vector.shape_cast %46 : vector<1x32x128xf32> to vector<32x128xf32>
    %48 = arith.subf %47, %45 : vector<32x128xf32>
    %c0_12 = arith.constant 0 : index
    %c0_13 = arith.constant 0 : index
    %c0_14 = arith.constant 0 : index
    %c0_15 = arith.constant 0 : index
    %49 = vector.load %arg9[%c0_12, %c0_13, %c0_14, %c0_15] : memref<1x4x32x128xf32, #tpu.memory_space<vmem>>, vector<1x1x32x128xf32>
    %50 = vector.shape_cast %49 : vector<1x1x32x128xf32> to vector<32x128xf32>
    %51 = vector.shape_cast %48 : vector<32x128xf32> to vector<1x1x32x128xf32>
    tpu.vector_store %arg9[%c0_12, %c0_13, %c0_14, %c0_15], %51 {strides = array<i32>} : memref<1x4x32x128xf32, #tpu.memory_space<vmem>>, vector<1x1x32x128xf32>,
    %52 = vector.extract_strided_slice %15 {offsets = [0, 0, 0], sizes = [1, 32, 128], strides = [1, 1, 1]} : vector<4x32x128xf32> to vector<1x32x128xf32>
    %53 = vector.shape_cast %52 : vector<1x32x128xf32> to vector<32x128xf32>
    %54 = arith.subf %53, %45 : vector<32x128xf32>
    %55 = arith.mulf %54, %54 : vector<32x128xf32>
    %c4 = arith.constant 4 : index
    %56 = memref.load %arg4[%c4] : memref<16xf32, #tpu.memory_space<smem>>
    %57 = vector.extract_strided_slice %16 {offsets = [0, 0, 0], sizes = [1, 32, 128], strides = [1, 1, 1]} : vector<4x32x128xf32> to vector<1x32x128xf32>
    %58 = vector.shape_cast %57 : vector<1x32x128xf32> to vector<32x128xf32>
    %59 = vector.broadcast %56 : f32 to vector<32x128xf32>
    %60 = arith.mulf %59, %58 : vector<32x128xf32>
    %c5 = arith.constant 5 : index
    %61 = memref.load %arg4[%c5] : memref<16xf32, #tpu.memory_space<smem>>
    %62 = vector.extract_strided_slice %16 {offsets = [1, 0, 0], sizes = [1, 32, 128], strides = [1, 1, 1]} : vector<4x32x128xf32> to vector<1x32x128xf32>
    %63 = vector.shape_cast %62 : vector<1x32x128xf32> to vector<32x128xf32>
    %64 = vector.broadcast %61 : f32 to vector<32x128xf32>
    %65 = arith.mulf %64, %63 : vector<32x128xf32>
    %66 = arith.addf %60, %65 : vector<32x128xf32>
    %c6 = arith.constant 6 : index
    %67 = memref.load %arg4[%c6] : memref<16xf32, #tpu.memory_space<smem>>
    %68 = vector.extract_strided_slice %16 {offsets = [2, 0, 0], sizes = [1, 32, 128], strides = [1, 1, 1]} : vector<4x32x128xf32> to vector<1x32x128xf32>
    %69 = vector.shape_cast %68 : vector<1x32x128xf32> to vector<32x128xf32>
    %70 = vector.broadcast %67 : f32 to vector<32x128xf32>
    %71 = arith.mulf %70, %69 : vector<32x128xf32>
    %72 = arith.addf %66, %71 : vector<32x128xf32>
    %c7 = arith.constant 7 : index
    %73 = memref.load %arg4[%c7] : memref<16xf32, #tpu.memory_space<smem>>
    %74 = vector.extract_strided_slice %16 {offsets = [3, 0, 0], sizes = [1, 32, 128], strides = [1, 1, 1]} : vector<4x32x128xf32> to vector<1x32x128xf32>
    %75 = vector.shape_cast %74 : vector<1x32x128xf32> to vector<32x128xf32>
    %76 = vector.broadcast %73 : f32 to vector<32x128xf32>
    %77 = arith.mulf %76, %75 : vector<32x128xf32>
    %78 = arith.addf %72, %77 : vector<32x128xf32>
    %c4_i32_16 = arith.constant 4 : i32
    %79 = arith.muli %arg0, %c4_i32_16 : i32
    %c1_i32 = arith.constant 1 : i32
    %80 = arith.addi %79, %c1_i32 : i32
    %81 = arith.index_cast %80 : i32 to index
    %82 = memref.load %arg5[%81] : memref<8xf32, #tpu.memory_space<smem>>
    %83 = vector.broadcast %82 : f32 to vector<32x128xf32>
    %84 = arith.addf %78, %83 : vector<32x128xf32>
    %85 = vector.extract_strided_slice %16 {offsets = [1, 0, 0], sizes = [1, 32, 128], strides = [1, 1, 1]} : vector<4x32x128xf32> to vector<1x32x128xf32>
    %86 = vector.shape_cast %85 : vector<1x32x128xf32> to vector<32x128xf32>
    %87 = arith.subf %86, %84 : vector<32x128xf32>
    %c0_17 = arith.constant 0 : index
    %c1_18 = arith.constant 1 : index
    %c0_19 = arith.constant 0 : index
    %c0_20 = arith.constant 0 : index
    %88 = vector.load %arg9[%c0_17, %c1_18, %c0_19, %c0_20] : memref<1x4x32x128xf32, #tpu.memory_space<vmem>>, vector<1x1x32x128xf32>
    %89 = vector.shape_cast %88 : vector<1x1x32x128xf32> to vector<32x128xf32>
    %90 = vector.shape_cast %87 : vector<32x128xf32> to vector<1x1x32x128xf32>
    tpu.vector_store %arg9[%c0_17, %c1_18, %c0_19, %c0_20], %90 {strides = array<i32>} : memref<1x4x32x128xf32, #tpu.memory_space<vmem>>, vector<1x1x32x128xf32>,
    %91 = vector.extract_strided_slice %15 {offsets = [1, 0, 0], sizes = [1, 32, 128], strides = [1, 1, 1]} : vector<4x32x128xf32> to vector<1x32x128xf32>
    %92 = vector.shape_cast %91 : vector<1x32x128xf32> to vector<32x128xf32>
    %93 = arith.subf %92, %84 : vector<32x128xf32>
    %94 = arith.mulf %93, %93 : vector<32x128xf32>
    %95 = arith.addf %55, %94 : vector<32x128xf32>
    %c8 = arith.constant 8 : index
    %96 = memref.load %arg4[%c8] : memref<16xf32, #tpu.memory_space<smem>>
    %97 = vector.extract_strided_slice %16 {offsets = [0, 0, 0], sizes = [1, 32, 128], strides = [1, 1, 1]} : vector<4x32x128xf32> to vector<1x32x128xf32>
    %98 = vector.shape_cast %97 : vector<1x32x128xf32> to vector<32x128xf32>
    %99 = vector.broadcast %96 : f32 to vector<32x128xf32>
    %100 = arith.mulf %99, %98 : vector<32x128xf32>
    %c9 = arith.constant 9 : index
    %101 = memref.load %arg4[%c9] : memref<16xf32, #tpu.memory_space<smem>>
    %102 = vector.extract_strided_slice %16 {offsets = [1, 0, 0], sizes = [1, 32, 128], strides = [1, 1, 1]} : vector<4x32x128xf32> to vector<1x32x128xf32>
    %103 = vector.shape_cast %102 : vector<1x32x128xf32> to vector<32x128xf32>
    %104 = vector.broadcast %101 : f32 to vector<32x128xf32>
    %105 = arith.mulf %104, %103 : vector<32x128xf32>
    %106 = arith.addf %100, %105 : vector<32x128xf32>
    %c10 = arith.constant 10 : index
    %107 = memref.load %arg4[%c10] : memref<16xf32, #tpu.memory_space<smem>>
    %108 = vector.extract_strided_slice %16 {offsets = [2, 0, 0], sizes = [1, 32, 128], strides = [1, 1, 1]} : vector<4x32x128xf32> to vector<1x32x128xf32>
    %109 = vector.shape_cast %108 : vector<1x32x128xf32> to vector<32x128xf32>
    %110 = vector.broadcast %107 : f32 to vector<32x128xf32>
    %111 = arith.mulf %110, %109 : vector<32x128xf32>
    %112 = arith.addf %106, %111 : vector<32x128xf32>
    %c11 = arith.constant 11 : index
    %113 = memref.load %arg4[%c11] : memref<16xf32, #tpu.memory_space<smem>>
    %114 = vector.extract_strided_slice %16 {offsets = [3, 0, 0], sizes = [1, 32, 128], strides = [1, 1, 1]} : vector<4x32x128xf32> to vector<1x32x128xf32>
    %115 = vector.shape_cast %114 : vector<1x32x128xf32> to vector<32x128xf32>
    %116 = vector.broadcast %113 : f32 to vector<32x128xf32>
    %117 = arith.mulf %116, %115 : vector<32x128xf32>
    %118 = arith.addf %112, %117 : vector<32x128xf32>
    %c4_i32_21 = arith.constant 4 : i32
    %119 = arith.muli %arg0, %c4_i32_21 : i32
    %c2_i32 = arith.constant 2 : i32
    %120 = arith.addi %119, %c2_i32 : i32
    %121 = arith.index_cast %120 : i32 to index
    %122 = memref.load %arg5[%121] : memref<8xf32, #tpu.memory_space<smem>>
    %123 = vector.broadcast %122 : f32 to vector<32x128xf32>
    %124 = arith.addf %118, %123 : vector<32x128xf32>
    %125 = vector.extract_strided_slice %16 {offsets = [2, 0, 0], sizes = [1, 32, 128], strides = [1, 1, 1]} : vector<4x32x128xf32> to vector<1x32x128xf32>
    %126 = vector.shape_cast %125 : vector<1x32x128xf32> to vector<32x128xf32>
    %127 = arith.subf %126, %124 : vector<32x128xf32>
    %c0_22 = arith.constant 0 : index
    %c2_23 = arith.constant 2 : index
    %c0_24 = arith.constant 0 : index
    %c0_25 = arith.constant 0 : index
    %128 = vector.load %arg9[%c0_22, %c2_23, %c0_24, %c0_25] : memref<1x4x32x128xf32, #tpu.memory_space<vmem>>, vector<1x1x32x128xf32>
    %129 = vector.shape_cast %128 : vector<1x1x32x128xf32> to vector<32x128xf32>
    %130 = vector.shape_cast %127 : vector<32x128xf32> to vector<1x1x32x128xf32>
    tpu.vector_store %arg9[%c0_22, %c2_23, %c0_24, %c0_25], %130 {strides = array<i32>} : memref<1x4x32x128xf32, #tpu.memory_space<vmem>>, vector<1x1x32x128xf32>,
    %131 = vector.extract_strided_slice %15 {offsets = [2, 0, 0], sizes = [1, 32, 128], strides = [1, 1, 1]} : vector<4x32x128xf32> to vector<1x32x128xf32>
    %132 = vector.shape_cast %131 : vector<1x32x128xf32> to vector<32x128xf32>
    %133 = arith.subf %132, %124 : vector<32x128xf32>
    %134 = arith.mulf %133, %133 : vector<32x128xf32>
    %135 = arith.addf %95, %134 : vector<32x128xf32>
    %c12 = arith.constant 12 : index
    %136 = memref.load %arg4[%c12] : memref<16xf32, #tpu.memory_space<smem>>
    %137 = vector.extract_strided_slice %16 {offsets = [0, 0, 0], sizes = [1, 32, 128], strides = [1, 1, 1]} : vector<4x32x128xf32> to vector<1x32x128xf32>
    %138 = vector.shape_cast %137 : vector<1x32x128xf32> to vector<32x128xf32>
    %139 = vector.broadcast %136 : f32 to vector<32x128xf32>
    %140 = arith.mulf %139, %138 : vector<32x128xf32>
    %c13 = arith.constant 13 : index
    %141 = memref.load %arg4[%c13] : memref<16xf32, #tpu.memory_space<smem>>
    %142 = vector.extract_strided_slice %16 {offsets = [1, 0, 0], sizes = [1, 32, 128], strides = [1, 1, 1]} : vector<4x32x128xf32> to vector<1x32x128xf32>
    %143 = vector.shape_cast %142 : vector<1x32x128xf32> to vector<32x128xf32>
    %144 = vector.broadcast %141 : f32 to vector<32x128xf32>
    %145 = arith.mulf %144, %143 : vector<32x128xf32>
    %146 = arith.addf %140, %145 : vector<32x128xf32>
    %c14 = arith.constant 14 : index
    %147 = memref.load %arg4[%c14] : memref<16xf32, #tpu.memory_space<smem>>
    %148 = vector.extract_strided_slice %16 {offsets = [2, 0, 0], sizes = [1, 32, 128], strides = [1, 1, 1]} : vector<4x32x128xf32> to vector<1x32x128xf32>
    %149 = vector.shape_cast %148 : vector<1x32x128xf32> to vector<32x128xf32>
    %150 = vector.broadcast %147 : f32 to vector<32x128xf32>
    %151 = arith.mulf %150, %149 : vector<32x128xf32>
    %152 = arith.addf %146, %151 : vector<32x128xf32>
    %c15 = arith.constant 15 : index
    %153 = memref.load %arg4[%c15] : memref<16xf32, #tpu.memory_space<smem>>
    %154 = vector.extract_strided_slice %16 {offsets = [3, 0, 0], sizes = [1, 32, 128], strides = [1, 1, 1]} : vector<4x32x128xf32> to vector<1x32x128xf32>
    %155 = vector.shape_cast %154 : vector<1x32x128xf32> to vector<32x128xf32>
    %156 = vector.broadcast %153 : f32 to vector<32x128xf32>
    %157 = arith.mulf %156, %155 : vector<32x128xf32>
    %158 = arith.addf %152, %157 : vector<32x128xf32>
    %c4_i32_26 = arith.constant 4 : i32
    %159 = arith.muli %arg0, %c4_i32_26 : i32
    %c3_i32 = arith.constant 3 : i32
    %160 = arith.addi %159, %c3_i32 : i32
    %161 = arith.index_cast %160 : i32 to index
    %162 = memref.load %arg5[%161] : memref<8xf32, #tpu.memory_space<smem>>
    %163 = vector.broadcast %162 : f32 to vector<32x128xf32>
    %164 = arith.addf %158, %163 : vector<32x128xf32>
    %165 = vector.extract_strided_slice %16 {offsets = [3, 0, 0], sizes = [1, 32, 128], strides = [1, 1, 1]} : vector<4x32x128xf32> to vector<1x32x128xf32>
    %166 = vector.shape_cast %165 : vector<1x32x128xf32> to vector<32x128xf32>
    %167 = arith.subf %166, %164 : vector<32x128xf32>
    %c0_27 = arith.constant 0 : index
    %c3_28 = arith.constant 3 : index
    %c0_29 = arith.constant 0 : index
    %c0_30 = arith.constant 0 : index
    %168 = vector.load %arg9[%c0_27, %c3_28, %c0_29, %c0_30] : memref<1x4x32x128xf32, #tpu.memory_space<vmem>>, vector<1x1x32x128xf32>
    %169 = vector.shape_cast %168 : vector<1x1x32x128xf32> to vector<32x128xf32>
    %170 = vector.shape_cast %167 : vector<32x128xf32> to vector<1x1x32x128xf32>
    tpu.vector_store %arg9[%c0_27, %c3_28, %c0_29, %c0_30], %170 {strides = array<i32>} : memref<1x4x32x128xf32, #tpu.memory_space<vmem>>, vector<1x1x32x128xf32>,
    %171 = vector.extract_strided_slice %15 {offsets = [3, 0, 0], sizes = [1, 32, 128], strides = [1, 1, 1]} : vector<4x32x128xf32> to vector<1x32x128xf32>
    %172 = vector.shape_cast %171 : vector<1x32x128xf32> to vector<32x128xf32>
    %173 = arith.subf %172, %164 : vector<32x128xf32>
    %174 = arith.mulf %173, %173 : vector<32x128xf32>
    %175 = arith.addf %135, %174 : vector<32x128xf32>
    %cst = arith.constant dense<0.000000e+00> : vector<128xf32>
    %176 = vector.multi_reduction <add>, %175, %cst [0] : vector<32x128xf32> to vector<128xf32>
    %177 = vector.shape_cast %176 : vector<128xf32> to vector<1x128xf32>
    %c0_31 = arith.constant 0 : index
    %c0_32 = arith.constant 0 : index
    %c0_33 = arith.constant 0 : index
    %c0_34 = arith.constant 0 : index
    %178 = vector.load %arg10[%c0_31, %c0_32, %c0_33, %c0_34] : memref<1x1x1x128xf32, #tpu.memory_space<vmem>>, vector<1x1x1x128xf32>
    %179 = vector.shape_cast %178 : vector<1x1x1x128xf32> to vector<1x128xf32>
    %180 = vector.shape_cast %177 : vector<1x128xf32> to vector<1x1x1x128xf32>
    tpu.vector_store %arg10[%c0_31, %c0_32, %c0_33, %c0_34], %180 {strides = array<i32>} : memref<1x1x1x128xf32, #tpu.memory_space<vmem>>, vector<1x1x1x128xf32>,
    return
  }
  func.func @transform_0(%arg0: i32, %arg1: i32, %arg2: memref<2xf32, #tpu.memory_space<smem>>, %arg3: memref<2xf32, #tpu.memory_space<smem>>, %arg4: memref<16xf32, #tpu.memory_space<smem>>, %arg5: memref<8xf32, #tpu.memory_space<smem>>) -> (i32, i32, i32, i32) {
    %c0_i32 = arith.constant 0 : i32
    %c0_i32_0 = arith.constant 0 : i32
    %c0_i32_1 = arith.constant 0 : i32
    return %arg0, %c0_i32, %arg1, %c0_i32_0 : i32, i32, i32, i32
  }
  func.func @transform_1(%arg0: i32, %arg1: i32, %arg2: memref<2xf32, #tpu.memory_space<smem>>, %arg3: memref<2xf32, #tpu.memory_space<smem>>, %arg4: memref<16xf32, #tpu.memory_space<smem>>, %arg5: memref<8xf32, #tpu.memory_space<smem>>) -> (i32, i32, i32, i32) {
    %c0_i32 = arith.constant 0 : i32
    %c0_i32_0 = arith.constant 0 : i32
    %c0_i32_1 = arith.constant 0 : i32
    return %arg0, %c0_i32, %arg1, %c0_i32_0 : i32, i32, i32, i32
  }
  func.func @transform_2(%arg0: i32, %arg1: i32, %arg2: memref<2xf32, #tpu.memory_space<smem>>, %arg3: memref<2xf32, #tpu.memory_space<smem>>, %arg4: memref<16xf32, #tpu.memory_space<smem>>, %arg5: memref<8xf32, #tpu.memory_space<smem>>) -> (i32, i32, i32, i32) {
    %c0_i32 = arith.constant 0 : i32
    %c0_i32_0 = arith.constant 0 : i32
    %c0_i32_1 = arith.constant 0 : i32
    return %arg0, %c0_i32, %arg1, %c0_i32_0 : i32, i32, i32, i32
  }
  func.func @transform_3(%arg0: i32, %arg1: i32, %arg2: memref<2xf32, #tpu.memory_space<smem>>, %arg3: memref<2xf32, #tpu.memory_space<smem>>, %arg4: memref<16xf32, #tpu.memory_space<smem>>, %arg5: memref<8xf32, #tpu.memory_space<smem>>) -> (i32, i32, i32, i32) {
    %c0_i32 = arith.constant 0 : i32
    %c0_i32_0 = arith.constant 0 : i32
    %c0_i32_1 = arith.constant 0 : i32
    return %arg0, %c0_i32, %arg1, %c0_i32_0 : i32, i32, i32, i32
  }
  func.func @transform_4(%arg0: i32, %arg1: i32, %arg2: memref<2xf32, #tpu.memory_space<smem>>, %arg3: memref<2xf32, #tpu.memory_space<smem>>, %arg4: memref<16xf32, #tpu.memory_space<smem>>, %arg5: memref<8xf32, #tpu.memory_space<smem>>) -> (i32, i32, i32, i32) {
    %c0_i32 = arith.constant 0 : i32
    %c0_i32_0 = arith.constant 0 : i32
    %c0_i32_1 = arith.constant 0 : i32
    return %arg0, %arg1, %c0_i32, %c0_i32_0 : i32, i32, i32, i32
  }
}

</mosaic_0001>

<bundles_post_ra>
// kernel: tpu_custom_call.1
= control target key start
LH: loop header
LB: loop body
LE: loop exit
PB: predicated region body
PF: predicated region fallthrough
CT: control target
= control target key end

     0   :  { %s1362_s11 = smov [#allocation3]   ;;  %s1363_s12 = smov [#allocation4]   ;;  %s2018_s0 = inlined_call_operand.hbm [shape: f32[2], index: 0, kind: input, shape index: {}]   ;;  %s2019_s4 = inlined_call_operand.hbm [shape: f32[2,4,32,128], index: 4, kind: input, shape index: {}]   ;;  %s2020_s5 = inlined_call_operand.hbm [shape: f32[2,4,32,128], index: 5, kind: input, shape index: {}]   ;;  %s2021_s6 = inlined_call_operand.hbm [shape: f32[2,4,32,128], index: 6, kind: input, shape index: {}]   ;;  %s2022_s7 = inlined_call_operand.hbm [shape: f32[2,4,32,128], index: 7, kind: output, shape index: {0}]   ;;  %s2023_s8 = inlined_call_operand.hbm [shape: f32[2,1,1,128], index: 8, kind: output, shape index: {1}]   ;;  %s2024_s1 = inlined_call_operand.hbm [shape: f32[2], index: 1, kind: input, shape index: {}]   ;;  %s2025_s2 = inlined_call_operand.vmem [shape: f32[16], index: 2, kind: input, shape index: {}]   ;;  %s2026_s3 = inlined_call_operand.vmem [shape: f32[8], index: 3, kind: input, shape index: {}]  }
   0x1   :  { %2033 = sst [smem:[#allocation27_spill]] %s2020_s5  ;;  %s15_s29 = sshll.u32 %s2018_s0, 4  ;;  %s16_s29 = int_to_ptr.hbm [resolvable:$true] %s15_s29 }
   0x2   :  { %s20_s10 = sshll.u32 %s2024_s1, 4  ;;  %s25_s15 = sshll.u32 %s2025_s2, 4  ;;  %s21_s10 = int_to_ptr.hbm [resolvable:$true] %s20_s10  ;;  %s26_s15 = int_to_ptr.vmem [resolvable:$true] %s25_s15 }
   0x3   :  { %18 = dma.hbm_to_smem %s16_s29, 16, %s1362_s11, [#allocation2] }
   0x4   :  { %23 = dma.hbm_to_smem %s21_s10, 16, %s1363_s12, [#allocation2] }
   0x5   :  { %s30_s18 = sshll.u32 %s2026_s3, 4  ;;  %s1364_s0 = smov [#allocation5]   ;;  %s31_s18 = int_to_ptr.vmem [resolvable:$true] %s30_s18 }
   0x6   :  { %28 = dma.vmem_to_smem %s26_s15, 16, %s1364_s0, [#allocation2] }
   0x7   :  { %s1365_s19 = smov [#allocation6]  }
   0x8   :  { %33 = dma.vmem_to_smem %s31_s18, 16, %s1365_s19, [#allocation2] }
   0x9   :  { %1320 = dma.done.wait [#allocation2], 64 }
   0xa   :  { %1321 = vsyncadd [#allocation2], 4294967232 }
   0xb   :  { %36 = sfence }
   0xc   :  { %37 = vsyncpa [#allocation8], 0 }
   0xd   :  { %39 = vsyncpa [#allocation8 + $0x1], 0 }
   0xe   :  { %40 = vsyncpa [#allocation11], 0 }
   0xf   :  { %42 = vsyncpa [#allocation11 + $0x1], 0 }
  0x10   :  { %43 = vsyncpa [#allocation9], 0 }
  0x11   :  { %45 = vsyncpa [#allocation9 + $0x1], 0 }
  0x12   :  { %46 = vsyncpa [#allocation15], 0 }
  0x13   :  { %48 = vsyncpa [#allocation15 + $0x1], 0  ;;  %s1427_s1 = smov 0   ;;  %s1429_s2 = smov 0  }
  0x14   :  { %s1431_s3 = smov 0   ;;  %s1433_s20 = smov 0  }
  0x15   :  { %s1435_s21 = smov 0   ;;  %s1437_s22 = smov 0  }
  0x16 LB: > { %2034 = sst [smem:[#allocation21_spill]] %s1348_s3  ;;  %s1458_s23 = sadd.s32 4294967295, %s1360_s22   ;;  %s1360_s22 = sphi %s1437_s22, %s54_s22   ;;  %s1356_s21 = sphi %s1435_s21, %s2052_s21   ;;  %s1352_s20 = sphi %s1433_s20, %s2051_s20   ;;  %s1348_s3 = sphi %s1431_s3, %s2050_s3   ;;  %s1344_s2 = sphi %s1429_s2, %s2054_s2   ;;  %s1340_s1 = sphi %s1427_s1, %s2053_s1  }
  0x17   : > { %2035 = sst [smem:[#allocation22_spill]] %s1356_s21  ;;  %s963_s24 = sadd.s32 4294967294, %s1360_s22  }
  0x18   : > { %2036 = sst [smem:[#allocation23_spill]] %s1360_s22  ;;  %s66_s25 = sadd.s32 1, %s1356_s21 }
  0x19   : > { %s75_s26 = sadd.s32 1, %s1348_s3  ;;  %p68_p0 = scmp.ge.s32.totalorder %s66_s25, 2 }
  0x1a   : > { %p82_p1 = scmp.ne.s32.totalorder %s1348_s3, %s1344_s2  ;;  %p83_p2 = scmp.eq.s32.totalorder %s1360_s22, 0 }
  0x1b   : > { %p88_p3 = scmp.ne.s32.totalorder %s1344_s2, %s1340_s1  ;;  %s2056_s25 = smov (%p68_p0, %s66_s25), 0 }
  0x1c   : > { %2037 = sst [smem:[#allocation24_spill]] %s2056_s25  ;;  %p1470_p4 = por %p83_p2, %p82_p1 }
  0x1d   : > { %p89_p5 = scmp.eq.s32.totalorder %s1458_s23, 0  ;;  %s70_s28 = ssub.s32 %s1356_s21, %s2056_s25 }
  0x1e   : > { %p170_p6 = scmp.eq.s32.totalorder %s1458_s23, 1  ;;  %p73_p7 = scmp.eq.s32.totalorder %s70_s28, 0 }
  0x1f   : > { %p1478_p8 = por %p89_p5, %p88_p3  ;;  %p176_p10 = scmp.eq.s32.totalorder %s963_s24, 1 }
  0x20   : > { %p1482_p9 = por %p170_p6, %p82_p1  ;;  %p965_p12 = scmp.ge.s32.totalorder %s1360_s22, 2 }
  0x21   : > { %s1487_s9 = scalar_select %p73_p7, %s1348_s3, %s75_s26  }
  0x22   : > { %p1489_p11 = por %p176_p10, %p88_p3  ;;  %p1044_p13 = scmp.lt.s32.totalorder %s1360_s22, 2 }
  0x23   : > { %2041 = sst [smem:[#allocation25_spill]] %s1487_s9  ;;  %s224_s11 = sand.u32 1, %s1348_s3  }
  0x24   : > { %s2042_s10 = scalar_select %p1489_p11, 1, 0 }
  0x25   : > { %s1496_s12 = sshll.u32 %s224_s11, 7  ;;  %s1013_s13 = sshll.u32 %s1356_s21, 7 }
  0x26   : > { %2043 = sst [smem:[#allocation26_spill]] %s2042_s10  ;;  %p1501_p0 = pnand %p1044_p13, %p1470_p4 }
  0x27   : > { %s248_s15 = sand.u32 1, %s1360_s22   ;;  %s2045_s5 = sld [smem:[#allocation27_spill]] }
  0x28   : > { %s252_s19 = scalar_lea.vmem [#allocation10], %s1496_s12  ;;  %s249_s26 = scalar_lea.sflag [#allocation11], %s248_s15 }
  0x29   : > { %s262_s24 = sshll.u32 %s252_s19, 4  ;;  %s1366_s28 = smov 128   ;;  %s263_s24 = int_to_ptr.vmem [resolvable:$true] %s262_s24 }
  0x2a   : > { %s1367_s27 = smov 8   ;;  %p975_p1 = scmp.ge.s32.totalorder %s1360_s22, 1 }
  0x2b   : > { %p294_p2 = scmp.lt.s32.totalorder %s1360_s22, 3  ;;  %s225_s15 = scalar_lea.sflag [#allocation8], %s224_s11 }
  0x2c   : > { %s283_s9 = scalar_lea.hbm %s2021_s6, %s1013_s13  ;;  %s276_s22 = scalar_lea.vmem [#allocation12], %s1496_s12 }
  0x2d   : > { %s259_s18 = scalar_lea.hbm %s2045_s5, %s1013_s13  ;;  %p1514_p3 = pnand %p975_p1, %p294_p2 }
  0x2e   : > { %s260_s0 = sshll.u32 %s259_s18, 4  ;;  %s235_s18 = scalar_lea.hbm %s2019_s4, %s1013_s13  ;;  %s261_s0 = int_to_ptr.hbm [resolvable:$true] %s260_s0 }
  0x2f   : > { %1033 = dma.hbm_to_vmem [thread:$0]  (!%p1501_p0), %s261_s0, 2048, %s263_s24, %s249_s26, %s1366_s28, %s1366_s28, %s1367_s27  }
  0x30   : > { %s236_s19 = sshll.u32 %s235_s18, 4  ;;  %s228_s5 = scalar_lea.vmem [#allocation7], %s1496_s12  ;;  %s237_s19 = int_to_ptr.hbm [resolvable:$true] %s236_s19 }
  0x31   : > { %s238_s21 = sshll.u32 %s228_s5, 4  ;;  %s284_s3 = sshll.u32 %s283_s9, 4  ;;  %s239_s21 = int_to_ptr.vmem [resolvable:$true] %s238_s21  ;;  %s285_s3 = int_to_ptr.hbm [resolvable:$true] %s284_s3 }
  0x32   : > { %1030 = dma.hbm_to_vmem [thread:$0]  (!%p1501_p0), %s237_s19, 2048, %s239_s21, %s225_s15, %s1366_s28, %s1366_s28, %s1367_s27  }
  0x33   : > { %s286_s10 = sshll.u32 %s276_s22, 4  ;;  %298 = sbr.rel (%p1514_p3) target bundleno = 163 (0xa3), region = 32  ;;  %s287_s10 = int_to_ptr.vmem [resolvable:$true] %s286_s10 }
  0x34   : > { %1036 = dma.hbm_to_vmem [thread:$0]  (!%p1501_p0), %s285_s3, 2048, %s287_s10, %s249_s26, %s1366_s28, %s1366_s28, %s1367_s27  }
  0x35   : > { %s1533_s5 = sand.u32 (!%p1514_p3), 1, %s1344_s2  }
  0x36   : > { %s1536_s21 = sshll.u32 (!%p1514_p3), %s1533_s5, 7  ;;  %s301_s11 = scalar_lea.sflag (!%p1514_p3), [#allocation8], %s1533_s5 }
  0x37   : > { %s1540_s9 = scalar_lea.vmem (!%p1514_p3), [#allocation7], %s1536_s21 }
  0x38   : > { %1323 = dma.done.wait (%p1478_p8), %s301_s11, 2048  }
  0x39   : > { %1325 = vsyncadd (%p1478_p8), %s301_s11, 4294965248  ;;  %s310_s3 = sand.u32 1, %s1458_s23   ;;  %s1548_s25 = scalar_lea.vmem [#allocation10], %s1536_s21 }
  0x3a   : > { %s311_s22 = scalar_lea.sflag [#allocation11], %s310_s3 }
  0x3b   : > { %1327 = dma.done.wait (%p1478_p8), %s311_s22, 4096  }
  0x3c   : > { %1329 = vsyncadd (%p1478_p8), %s311_s22, 4294963200  ;;  %s368_s10 = sld [smem:[#allocation3 + %s1352_s20]]  ;;  %s1557_s14 = sshll.u32 %s1352_s20, 2  ;;  %v370_v0 = vld [vmem:[%s1540_s9] sm:$0xff]  ;;  %v371_v25 = vld [vmem:[%s1540_s9 + $0x8] sm:$0xff] }
  0x3d   : > { %s369_s23 = sld [smem:[#allocation4 + %s1352_s20]]  ;;  %v374_v1 = vld [vmem:[%s1540_s9 + $0x20] sm:$0xff]  ;;  %s1579_s27 = scalar_lea.vmem [#allocation12], %s1536_s21  ;;  %v375_v26 = vld [vmem:[%s1540_s9 + $0x28] sm:$0xff]  ;;  %v1644_v57 = vld [vmem:[%s1540_s9 + $0x10] sm:$0xff] }
  0x3e   : > { %s500_s12 = sld [smem:[#allocation5]]  ;;  %v378_v2 = vld [vmem:[%s1540_s9 + $0x40] sm:$0xff]  ;;  %v1597_v27 = vld [vmem:[%s1540_s9 + $0x48] sm:$0xff]  ;;  %v1647_v58 = vld [vmem:[%s1540_s9 + $0x30] sm:$0xff]  ;;  %s1746_s17 = scalar_lea.vmem [#allocation13], %s1536_s21 }
  0x3f   : > { %s980_s13 = sld [smem:[#allocation5 + $0x1]]  ;;  %v382_v4 = vld [vmem:[%s1540_s9 + $0x60] sm:$0xff]  ;;  %v383_v32 = vld [vmem:[%s1540_s9 + $0x68] sm:$0xff]  ;;  %v388_v59 = vld [vmem:[%s1548_s25 + $0x10] sm:$0xff]  ;;  %s595_s0 = sadd.s32 1, %s1557_s14 }
  0x40   : > { %s1559_s29 = sld [smem:[#allocation5 + $0x2]]  ;;  %v386_v5 = vld [vmem:[%s1548_s25] sm:$0xff]  ;;  %v387_v33 = vld [vmem:[%s1548_s25 + $0x8] sm:$0xff]  ;;  %s659_s22 = sadd.s32 2, %s1557_s14 }
  0x41   : > { %s1561_s26 = sld [smem:[#allocation5 + $0x3]]  ;;  %v390_v6 = vld [vmem:[%s1548_s25 + $0x20] sm:$0xff]  ;;  %v418_v11 = vsub.f32 %v386_v5, %v370_v0  ;;  %v391_v34 = vld [vmem:[%s1548_s25 + $0x28] sm:$0xff]  ;;  %v419_v44 = vsub.f32 %v387_v33, %v371_v25  ;;  %v408_v33 = vld [vmem:[%s1579_s27 + $0x30] sm:$0xff] }
  0x42   : > { %v1566_v3 = vstv %s368_s10  ;;  %s1569_s28 = sld [smem:[#allocation6 + %s1557_s14]]  ;;  %v394_v8 = vld [vmem:[%s1548_s25 + $0x40] sm:$0xff]  ;;  %v422_v12 = vsub.f32 %v390_v6, %v374_v1  ;;  %v395_v39 = vld [vmem:[%s1548_s25 + $0x48] sm:$0xff]  ;;  %v423_v45 = vsub.f32 %v391_v34, %v375_v26 }
  0x43   : > { %v1574_v7 = vstv %s369_s23  ;;  %v398_v9 = vld [vmem:[%s1548_s25 + $0x60] sm:$0xff]  ;;  %v426_v17 = vsub.f32 %v394_v8, %v378_v2  ;;  %v435_v21 = vmul.f32 %v1566_v3, %v418_v11  ;;  %v399_v40 = vld [vmem:[%s1548_s25 + $0x68] sm:$0xff]  ;;  %v427_v51 = vsub.f32 %v395_v39, %v1597_v27  ;;  %s1733_s16 = sld [smem:[#allocation5 + $0x4]] }
  0x44   : > { %v402_v10 = vld [vmem:[%s1579_s27] sm:$0xff]  ;;  %v1582_v13 = vstv %s500_s12  ;;  %v430_v18 = vsub.f32 %v398_v9, %v382_v4  ;;  %v439_v22 = vmul.f32 %v1566_v3, %v422_v12  ;;  %v403_v43 = vld [vmem:[%s1579_s27 + $0x8] sm:$0xff]  ;;  %v431_v52 = vsub.f32 %v399_v40, %v383_v32  ;;  %v384_v9 = vld [vmem:[%s1540_s9 + $0x70] sm:$0xff]  ;;  %s1753_s18 = sld [smem:[#allocation5 + $0x5]] }
  0x45   : > { %v406_v14 = vld [vmem:[%s1579_s27 + $0x20] sm:$0xff]  ;;  %v452_v19 = vmul.f32 %v1574_v7, %v402_v10  ;;  %v1588_v20 = vstv %s980_s13  ;;  %v443_v28 = vmul.f32 %v1566_v3, %v426_v17  ;;  %v407_v48 = vld [vmem:[%s1579_s27 + $0x28] sm:$0xff]  ;;  %v436_v55 = vmul.f32 %v1566_v3, %v419_v44  ;;  %v400_v10 = vld [vmem:[%s1548_s25 + $0x70] sm:$0xff]  ;;  %s1766_s19 = sld [smem:[#allocation5 + $0x6]] }
  0x46   : > { %v410_v15 = vld [vmem:[%s1579_s27 + $0x40] sm:$0xff]  ;;  %v456_v23 = vmul.f32 %v1574_v7, %v406_v14  ;;  %v447_v29 = vmul.f32 %v1566_v3, %v430_v18  ;;  %v1603_v31 = vstv %s1559_s29  ;;  %v411_v49 = vld [vmem:[%s1579_s27 + $0x48] sm:$0xff]  ;;  %v440_v56 = vmul.f32 %v1566_v3, %v423_v45  ;;  %v416_v45 = vld [vmem:[%s1579_s27 + $0x70] sm:$0xff]  ;;  %s1782_s15 = sld [smem:[#allocation5 + $0x7]]  ;;  %s723_s29 = sadd.s32 3, %s1557_s14 }
  0x47   : > { %v414_v16 = vld [vmem:[%s1579_s27 + $0x60] sm:$0xff]  ;;  %v460_v24 = vmul.f32 %v1574_v7, %v410_v15  ;;  %v1608_v35 = vadd.f32 %v452_v19, %v435_v21  ;;  %v1613_v37 = vstv %s1561_s26  ;;  %v415_v50 = vld [vmem:[%s1579_s27 + $0x68] sm:$0xff]  ;;  %v444_v62 = vmul.f32 %v1566_v3, %v427_v51  ;;  %v1709_v51 = vld [vmem:[%s1540_s9 + $0x18] sm:$0xff]  ;;  %s1797_s24 = sld [smem:[#allocation6 + %s595_s0]]  ;;  %s1016_s26 = sshll.u32 %s1352_s20, 7 }
  0x48   : > { %v464_v30 = vmul.f32 %v1574_v7, %v414_v16  ;;  %v1610_v36 = vadd.f32 %v456_v23, %v439_v22  ;;  %v1616_v38 = vstv %s1569_s28  ;;  %v448_v63 = vmul.f32 %v1566_v3, %v431_v52  ;;  %s1827_s21 = sld [smem:[#allocation5 + $0x8]] }
  0x49   : > { %v1620_v41 = vadd.f32 %v460_v24, %v443_v28  ;;  %v1626_v46 = vadd.f32 %v1608_v35, %v370_v0  ;;  %v1657_v0 = vld [vmem:[%s1540_s9 + $0x50] sm:$0xff]  ;;  %v453_v6 = vmul.f32 %v1574_v7, %v403_v43  ;;  %v457_v8 = vmul.f32 %v1574_v7, %v407_v48  ;;  %s1838_s11 = sld [smem:[#allocation5 + $0x9]] }
  0x4a   : > { %v1622_v42 = vadd.f32 %v464_v30, %v447_v29  ;;  %v1629_v47 = vadd.f32 %v1610_v36, %v374_v1  ;;  %v392_v1 = vld [vmem:[%s1548_s25 + $0x30] sm:$0xff]  ;;  %v461_v12 = vmul.f32 %v1574_v7, %v411_v49  ;;  %v465_v14 = vmul.f32 %v1574_v7, %v415_v50  ;;  %s1851_s3 = sld [smem:[#allocation5 + $0xb]] }
  0x4b   : > { %v1636_v53 = vadd.f32 %v1620_v41, %v378_v2  ;;  %v502_v60 = vmul.f32 %v1582_v13, %v1626_v46  ;;  %v396_v2 = vld [vmem:[%s1548_s25 + $0x50] sm:$0xff]  ;;  %v420_v15 = vsub.f32 %v388_v59, %v1644_v57  ;;  %v1672_v16 = vadd.f32 %v453_v6, %v436_v55  ;;  %s1878_s10 = sld [smem:[#allocation5 + $0xc]] }
  0x4c   : > { %v1639_v54 = vadd.f32 %v1622_v42, %v382_v4  ;;  %v508_v61 = vmul.f32 %v1588_v20, %v1629_v47  ;;  %v1674_v17 = vadd.f32 %v457_v8, %v440_v56  ;;  %v424_v18 = vsub.f32 %v392_v1, %v1647_v58  ;;  %v404_v24 = vld [vmem:[%s1579_s27 + $0x10] sm:$0xff]  ;;  %s1883_s23 = sld [smem:[#allocation5 + $0xd]] }
  0x4d   : > { %v518_v4 = vmul.f32 %v1603_v31, %v1636_v53  ;;  %v428_v19 = vsub.f32 %v396_v2, %v1657_v0  ;;  %v1678_v22 = vadd.f32 %v461_v12, %v444_v62  ;;  %v1680_v23 = vadd.f32 %v465_v14, %v448_v63  ;;  %v381_v2 = vld [vmem:[%s1540_s9 + $0x58] sm:$0xff]  ;;  %s1886_s12 = sld [smem:[#allocation5 + $0xe]] }
  0x4e   : > { %v528_v5 = vmul.f32 %v1613_v37, %v1639_v54  ;;  %v512_v11 = vadd.f32 %v508_v61, %v502_v60  ;;  %v432_v28 = vsub.f32 %v400_v10, %v384_v9  ;;  %v1684_v29 = vadd.f32 %v1672_v16, %v371_v25  ;;  %v412_v25 = vld [vmem:[%s1579_s27 + $0x50] sm:$0xff]  ;;  %v377_v60 = vld [vmem:[%s1540_s9 + $0x38] sm:$0xff]  ;;  %s1894_s13 = sld [smem:[#allocation5 + $0xf]] }
  0x4f   : > { %v1687_v30 = vadd.f32 %v1674_v17, %v375_v26  ;;  %v437_v34 = vmul.f32 %v1566_v3, %v420_v15  ;;  %v441_v39 = vmul.f32 %v1566_v3, %v424_v18  ;;  %v1694_v43 = vadd.f32 %v1678_v22, %v1597_v27  ;;  %v385_v18 = vld [vmem:[%s1540_s9 + $0x78] sm:$0xff]  ;;  %s1844_s9 = sld [smem:[#allocation5 + $0xa]] }
  0x50   : > { %v522_v21 = vadd.f32 %v518_v4, %v512_v11  ;;  %v1697_v44 = vadd.f32 %v1680_v23, %v383_v32  ;;  %v445_v48 = vmul.f32 %v1566_v3, %v428_v19  ;;  %v503_v26 = vmul.f32 %v1582_v13, %v1684_v29  ;;  %v389_v32 = vld [vmem:[%s1548_s25 + $0x18] sm:$0xff]  ;;  %s1912_s14 = sld [smem:[#allocation6 + %s723_s29]] }
  0x51   : > { %v509_v49 = vmul.f32 %v1588_v20, %v1687_v30  ;;  %v449_v50 = vmul.f32 %v1566_v3, %v432_v28  ;;  %v454_v27 = vmul.f32 %v1574_v7, %v404_v24  ;;  %v519_v55 = vmul.f32 %v1603_v31, %v1694_v43  ;;  %v393_v4 = vld [vmem:[%s1548_s25 + $0x38] sm:$0xff] }
  0x52   : > { %v532_v40 = vadd.f32 %v528_v5, %v522_v21  ;;  %v529_v56 = vmul.f32 %v1613_v37, %v1697_v44  ;;  %v458_v59 = vmul.f32 %v1574_v7, %v408_v33  ;;  %v462_v62 = vmul.f32 %v1574_v7, %v412_v25  ;;  %v397_v5 = vld [vmem:[%s1548_s25 + $0x58] sm:$0xff] }
  0x53   : > { %v513_v61 = vadd.f32 %v509_v49, %v503_v26  ;;  %v466_v63 = vmul.f32 %v1574_v7, %v416_v45  ;;  %v1723_v1 = vadd.f32 %v454_v27, %v437_v34  ;;  %v421_v10 = vsub.f32 %v389_v32, %v1709_v51  ;;  %v401_v19 = vld [vmem:[%s1548_s25 + $0x78] sm:$0xff]  ;;  %s1859_s25 = sld [smem:[#allocation6 + %s659_s22]] }
  0x54   : > { %v1713_v52 = vadd.f32 %v1616_v38, %v532_v40  ;;  %v1730_v8 = vadd.f32 %v458_v59, %v441_v39  ;;  %v1735_v12 = vadd.f32 %v462_v62, %v445_v48  ;;  %v425_v24 = vsub.f32 %v393_v4, %v377_v60  ;;  %v405_v40 = vld [vmem:[%s1579_s27 + $0x18] sm:$0xff] }
  0x55   : > { %v523_v11 = vadd.f32 %v519_v55, %v513_v61  ;;  %v1737_v14 = vadd.f32 %v466_v63, %v449_v50  ;;  %v1741_v15 = vadd.f32 %v1723_v1, %v1644_v57  ;;  %v429_v28 = vsub.f32 %v397_v5, %v381_v2  ;;  %v409_v25 = vld [vmem:[%s1579_s27 + $0x38] sm:$0xff] }
  0x56   : > { %v543_v6 = vsub.f32 %v1626_v46, %v1713_v52  ;;  %v1751_v21 = vadd.f32 %v1730_v8, %v1647_v58  ;;  %v1757_v57 = vadd.f32 %v1735_v12, %v1657_v0  ;;  %v413_v45 = vld [vmem:[%s1579_s27 + $0x58] sm:$0xff]  ;;  %v433_v26 = vsub.f32 %v401_v19, %v385_v18 }
  0x57   : > { %v533_v33 = vadd.f32 %v529_v56, %v523_v11  ;;  %v1760_v34 = vadd.f32 %v1737_v14, %v384_v9  ;;  %v504_v39 = vmul.f32 %v1582_v13, %v1741_v15  ;;  %v417_v48 = vld [vmem:[%s1579_s27 + $0x78] sm:$0xff]  ;;  %v438_v0 = vmul.f32 %v1566_v3, %v421_v10 }
  0x58   : > { %547 = vst [vmem:[%s1746_s17] sm:$0xff] %v543_v6  ;;  %v510_v58 = vmul.f32 %v1588_v20, %v1751_v21  ;;  %v442_v49 = vmul.f32 %v1566_v3, %v425_v24  ;;  %v520_v50 = vmul.f32 %v1603_v31, %v1757_v57  ;;  %v446_v32 = vmul.f32 %v1566_v3, %v429_v28 }
  0x59   : > { %v1775_v9 = vadd.f32 %v1616_v38, %v533_v33  ;;  %v530_v27 = vmul.f32 %v1613_v37, %v1760_v34  ;;  %v450_v56 = vmul.f32 %v1566_v3, %v433_v26  ;;  %v455_v59 = vmul.f32 %v1574_v7, %v405_v40 }
  0x5a   : > { %v514_v55 = vadd.f32 %v510_v58, %v504_v39  ;;  %v459_v61 = vmul.f32 %v1574_v7, %v409_v25  ;;  %v463_v63 = vmul.f32 %v1574_v7, %v413_v45  ;;  %v467_v4 = vmul.f32 %v1574_v7, %v417_v48 }
  0x5b   : > { %v544_v62 = vsub.f32 %v1684_v29, %v1775_v9  ;;  %v1792_v6 = vadd.f32 %v455_v59, %v438_v0  ;;  %v560_v11 = vstv %s1733_s16  ;;  %v566_v39 = vstv %s1753_s18  ;;  %s779_s16 = scalar_lea.hbm %s2022_s7, %s1016_s26  ;;  %s780_s18 = sshll.u32 %s1746_s17, 4  ;;  %s1962_s18 = int_to_ptr.vmem [resolvable:$true] %s780_s18 }
  0x5c   : > { %v524_v5 = vadd.f32 %v520_v50, %v514_v55  ;;  %v1794_v10 = vadd.f32 %v459_v61, %v442_v49  ;;  %v1800_v3 = vadd.f32 %v463_v63, %v446_v32  ;;  %v1802_v19 = vadd.f32 %v467_v4, %v450_v56 }
  0x5d   : > { %548 = vst [vmem:[%s1746_s17 + $0x8] sm:$0xff] %v544_v62  ;;  %v561_v24 = vmul.f32 %v560_v11, %v1626_v46  ;;  %v1807_v7 = vadd.f32 %v1792_v6, %v1709_v51  ;;  %v567_v58 = vmul.f32 %v566_v39, %v1629_v47  ;;  %v576_v45 = vstv %s1766_s19  ;;  %s782_s19 = sshll.u32 %s779_s16, 4  ;;  %s783_s19 = int_to_ptr.hbm [resolvable:$true] %s782_s19 }
  0x5e   : > { %v534_v28 = vadd.f32 %v530_v27, %v524_v5  ;;  %v1810_v33 = vadd.f32 %v1794_v10, %v377_v60  ;;  %v1814_v40 = vadd.f32 %v1800_v3, %v381_v2  ;;  %v1817_v25 = vadd.f32 %v1802_v19, %v385_v18  ;;  %s1254_s0 = sshra.s32 %s783_s19, 4  ;;  %s1255_s0 = int_to_ptr.hbm [resolvable:$true] %s1254_s0 }
  0x5f   : > { %v505_v51 = vmul.f32 %v1582_v13, %v1807_v7  ;;  %v577_v26 = vmul.f32 %v576_v45, %v1636_v53  ;;  %v571_v18 = vadd.f32 %v567_v58, %v561_v24  ;;  %v586_v0 = vstv %s1782_s15  ;;  %s762_s15 = scalar_lea.sflag [#allocation9], %s1533_s5  ;;  %p1261_p7 = scmp.lt.s32.totalorder %s1255_s0, %s2022_s7 }
  0x60   : > { %v541_v48 = vadd.f32 %v1616_v38, %v534_v28  ;;  %v511_v60 = vmul.f32 %v1588_v20, %v1810_v33  ;;  %v521_v2 = vmul.f32 %v1603_v31, %v1814_v40  ;;  %v531_v27 = vmul.f32 %v1613_v37, %v1817_v25 }
  0x61   : > { %v587_v13 = vmul.f32 %v586_v0, %v1639_v54  ;;  %v581_v32 = vadd.f32 %v577_v26, %v571_v18  ;;  %v562_v20 = vmul.f32 %v560_v11, %v1684_v29  ;;  %v568_v55 = vmul.f32 %v566_v39, %v1687_v30 }
  0x62   : > { %v545_v49 = vsub.f32 %v1741_v15, %v541_v48  ;;  %v515_v50 = vadd.f32 %v511_v60, %v505_v51  ;;  %v597_v56 = vstv %s1797_s24  ;;  %v578_v59 = vmul.f32 %v576_v45, %v1694_v43  ;;  %s1256_s24 = scalar_lea.hbm %s1255_s0, 128 }
  0x63   : > { %v588_v61 = vmul.f32 %v586_v0, %v1697_v44  ;;  %v591_v37 = vadd.f32 %v587_v13, %v581_v32  ;;  %v572_v62 = vadd.f32 %v568_v55, %v562_v20  ;;  %v563_v63 = vmul.f32 %v560_v11, %v1741_v15  ;;  %p1257_p4 = scmp.ne.s32.totalorder %s1255_s0, %s1256_s24 }
  0x64   : > { %549 = vst [vmem:[%s1746_s17 + $0x10] sm:$0xff] %v545_v49  ;;  %v525_v31 = vadd.f32 %v521_v2, %v515_v50  ;;  %v569_v4 = vmul.f32 %v566_v39, %v1751_v21  ;;  %v579_v24 = vmul.f32 %v576_v45, %v1757_v57  ;;  %v589_v28 = vmul.f32 %v586_v0, %v1760_v34 }
  0x65   : > { %v564_v58 = vmul.f32 %v560_v11, %v1807_v7  ;;  %v598_v51 = vadd.f32 %v597_v56, %v591_v37  ;;  %v582_v60 = vadd.f32 %v578_v59, %v572_v62  ;;  %v570_v2 = vmul.f32 %v566_v39, %v1810_v33  ;;  %p1258_p5 = pnand %p1257_p4, %p1482_p9 }
  0x66   : > { %v535_v5 = vadd.f32 %v531_v27, %v525_v31  ;;  %v573_v26 = vadd.f32 %v569_v4, %v563_v63  ;;  %v580_v49 = vmul.f32 %v576_v45, %v1814_v40  ;;  %v624_v50 = vstv %s1827_s21 }
  0x67   : > { %v602_v27 = vsub.f32 %v1629_v47, %v598_v51  ;;  %v592_v13 = vadd.f32 %v588_v61, %v582_v60  ;;  %v574_v20 = vadd.f32 %v570_v2, %v564_v58  ;;  %v590_v55 = vmul.f32 %v586_v0, %v1817_v25  ;;  %p1259_p6 = pneg %p1258_p5 }
  0x68   : > { %v542_v18 = vadd.f32 %v1616_v38, %v535_v5  ;;  %v583_v11 = vadd.f32 %v579_v24, %v573_v26  ;;  %v625_v39 = vmul.f32 %v624_v50, %v1626_v46  ;;  %v551_v38 = vsub.f32 %v1608_v35, %v1713_v52 }
  0x69   : > { %988 = vst [vmem:[%s1746_s17 + $0x20] sm:$0xff] %v602_v27  ;;  %v599_v45 = vadd.f32 %v597_v56, %v592_v13  ;;  %v630_v59 = vstv %s1838_s11  ;;  %v552_v61 = vsub.f32 %v1672_v16, %v1775_v9  ;;  %v584_v37 = vadd.f32 %v580_v49, %v574_v20 }
  0x6a   : > { %v546_v32 = vsub.f32 %v1807_v7, %v542_v18  ;;  %v593_v31 = vadd.f32 %v589_v28, %v583_v11  ;;  %v631_v62 = vmul.f32 %v630_v59, %v1629_v47  ;;  %v640_v63 = vstv %s1844_s9  ;;  %s1260_s9 = scalar_lea.hbm %s2022_s7, 256 }
  0x6b   : > { %v553_v0 = vsub.f32 %v1723_v1, %v541_v48  ;;  %v611_v4 = vsub.f32 %v1610_v36, %v598_v51  ;;  %v603_v35 = vsub.f32 %v1687_v30, %v599_v45  ;;  %v594_v5 = vadd.f32 %v590_v55, %v584_v37  ;;  %p1262_p8 = scmp.lt.s32.totalorder %s1260_s9, %s1256_s24 }
  0x6c   : > { %550 = vst [vmem:[%s1746_s17 + $0x18] sm:$0xff] %v546_v32  ;;  %v600_v52 = vadd.f32 %v597_v56, %v593_v31  ;;  %v635_v24 = vadd.f32 %v631_v62, %v625_v39  ;;  %v641_v28 = vmul.f32 %v640_v63, %v1636_v53  ;;  %v650_v58 = vstv %s1851_s3 }
  0x6d   : > { %v555_v16 = vmul.f32 %v551_v38, %v551_v38  ;;  %989 = vst [vmem:[%s1746_s17 + $0x28] sm:$0xff] %v603_v35  ;;  %v651_v1 = vmul.f32 %v650_v58, %v1639_v54  ;;  %v556_v36 = vmul.f32 %v552_v61, %v552_v61  ;;  %v601_v48 = vadd.f32 %v597_v56, %v594_v5  ;;  %p1263_p10 = por %p1262_p8, %p1261_p7 }
  0x6e   : > { %v604_v9 = vsub.f32 %v1751_v21, %v600_v52  ;;  %v645_v51 = vadd.f32 %v641_v28, %v635_v24  ;;  %v626_v60 = vmul.f32 %v624_v50, %v1684_v29  ;;  %v557_v26 = vmul.f32 %v553_v0, %v553_v0 }
  0x6f   : > { %v661_v2 = vstv %s1859_s25  ;;  %v632_v49 = vmul.f32 %v630_v59, %v1687_v30  ;;  %v642_v27 = vmul.f32 %v640_v63, %v1694_v43  ;;  %v554_v13 = vsub.f32 %v1792_v6, %v542_v18  ;;  %p1264_p13 = pnand %p1263_p10, %p1259_p6 }
  0x70   : > { %990 = vst [vmem:[%s1746_s17 + $0x30] sm:$0xff] %v604_v9  ;;  %v615_v11 = vmul.f32 %v611_v4, %v611_v4  ;;  %v605_v32 = vsub.f32 %v1810_v33, %v601_v48  ;;  %v655_v56 = vadd.f32 %v651_v1, %v645_v51  ;;  %v652_v55 = vmul.f32 %v650_v58, %v1697_v44 }
  0x71   : > { %v636_v20 = vadd.f32 %v632_v49, %v626_v60  ;;  %v627_v39 = vmul.f32 %v624_v50, %v1741_v15  ;;  %v633_v38 = vmul.f32 %v630_v59, %v1751_v21  ;;  %v612_v31 = vsub.f32 %v1674_v17, %v599_v45 }
  0x72   : > { %991 = vst [vmem:[%s1746_s17 + $0x38] sm:$0xff] %v605_v32  ;;  %v662_v61 = vadd.f32 %v661_v2, %v655_v56  ;;  %v643_v37 = vmul.f32 %v640_v63, %v1757_v57  ;;  %v653_v6 = vmul.f32 %v650_v58, %v1760_v34  ;;  %v628_v0 = vmul.f32 %v624_v50, %v1807_v7 }
  0x73   : > { %v646_v18 = vadd.f32 %v642_v27, %v636_v20  ;;  %v637_v62 = vadd.f32 %v633_v38, %v627_v39  ;;  %v634_v4 = vmul.f32 %v630_v59, %v1810_v33  ;;  %v1906_v35 = vmul.f32 %v554_v13, %v554_v13 }
  0x74   : > { %v613_v17 = vsub.f32 %v1730_v8, %v600_v52  ;;  %v666_v45 = vsub.f32 %v1636_v53, %v662_v61  ;;  %v644_v5 = vmul.f32 %v640_v63, %v1814_v40  ;;  %v654_v1 = vmul.f32 %v650_v58, %v1817_v25 }
  0x75   : > { %v656_v24 = vadd.f32 %v652_v55, %v646_v18  ;;  %v647_v28 = vadd.f32 %v643_v37, %v637_v62  ;;  %v638_v9 = vadd.f32 %v634_v4, %v628_v0  ;;  %v616_v51 = vmul.f32 %v612_v31, %v612_v31 }
  0x76   : > { %996 = vst [vmem:[%s1746_s17 + $0x40] sm:$0xff] %v666_v45  ;;  %v688_v50 = vstv %s1878_s10  ;;  %v694_v59 = vstv %s1883_s23  ;;  %v704_v60 = vstv %s1886_s12  ;;  %v617_v63 = vmul.f32 %v613_v17, %v613_v17 }
  0x77   : > { %v663_v49 = vadd.f32 %v661_v2, %v656_v24  ;;  %v657_v27 = vadd.f32 %v653_v6, %v647_v28  ;;  %v648_v8 = vadd.f32 %v644_v5, %v638_v9  ;;  %v689_v52 = vmul.f32 %v688_v50, %v1626_v46 }
  0x78   : > { %v695_v13 = vmul.f32 %v694_v59, %v1629_v47  ;;  %v705_v32 = vmul.f32 %v704_v60, %v1636_v53  ;;  %v714_v56 = vstv %s1894_s13  ;;  %v619_v58 = vadd.f32 %v615_v11, %v555_v16 }
  0x79   : > { %v667_v20 = vsub.f32 %v1694_v43, %v663_v49  ;;  %v664_v55 = vadd.f32 %v661_v2, %v657_v27  ;;  %v658_v39 = vadd.f32 %v654_v1, %v648_v8  ;;  %v620_v38 = vadd.f32 %v616_v51, %v556_v36 }
  0x7a   : > { %v699_v31 = vadd.f32 %v695_v13, %v689_v52  ;;  %v715_v37 = vmul.f32 %v714_v56, %v1639_v54  ;;  %v690_v6 = vmul.f32 %v688_v50, %v1684_v29  ;;  %v614_v46 = vsub.f32 %v1794_v10, %v601_v48 }
  0x7b   : > { %v675_v47 = vsub.f32 %v1620_v41, %v662_v61  ;;  %997 = vst [vmem:[%s1746_s17 + $0x48] sm:$0xff] %v667_v20  ;;  %v668_v53 = vsub.f32 %v1757_v57, %v664_v55  ;;  %v665_v16 = vadd.f32 %v661_v2, %v658_v39  ;;  %v621_v11 = vadd.f32 %v617_v63, %v557_v26 }
  0x7c   : > { %v709_v18 = vadd.f32 %v705_v32, %v699_v31  ;;  %v696_v62 = vmul.f32 %v694_v59, %v1687_v30  ;;  %v706_v36 = vmul.f32 %v704_v60, %v1694_v43  ;;  %v676_v0 = vsub.f32 %v1678_v22, %v663_v49 }
  0x7d   : > { %998 = vst [vmem:[%s1746_s17 + $0x50] sm:$0xff] %v668_v53  ;;  %v669_v29 = vsub.f32 %v1814_v40, %v665_v16  ;;  %v725_v4 = vstv %s1912_s14  ;;  %v716_v10 = vmul.f32 %v714_v56, %v1697_v44  ;;  %v691_v2 = vmul.f32 %v688_v50, %v1741_v15 }
  0x7e   : > { %v719_v41 = vadd.f32 %v715_v37, %v709_v18  ;;  %v700_v48 = vadd.f32 %v696_v62, %v690_v6  ;;  %v697_v26 = vmul.f32 %v694_v59, %v1751_v21  ;;  %v679_v61 = vmul.f32 %v675_v47, %v675_v47 }
  0x7f   : > { %v677_v30 = vsub.f32 %v1735_v12, %v664_v55  ;;  %999 = vst [vmem:[%s1746_s17 + $0x58] sm:$0xff] %v669_v29  ;;  %v707_v43 = vmul.f32 %v704_v60, %v1757_v57  ;;  %v717_v22 = vmul.f32 %v714_v56, %v1760_v34  ;;  %v692_v24 = vmul.f32 %v688_v50, %v1807_v7 }
  0x80   : > { %v726_v17 = vadd.f32 %v725_v4, %v719_v41  ;;  %v710_v45 = vadd.f32 %v706_v36, %v700_v48  ;;  %v701_v5 = vadd.f32 %v697_v26, %v691_v2  ;;  %v618_v28 = vmul.f32 %v614_v46, %v614_v46 }
  0x81   : > { %v680_v9 = vmul.f32 %v676_v0, %v676_v0  ;;  %v698_v15 = vmul.f32 %v694_v59, %v1810_v33  ;;  %v708_v21 = vmul.f32 %v704_v60, %v1814_v40  ;;  %v681_v49 = vmul.f32 %v677_v30, %v677_v30 }
  0x82   : > { %v730_v12 = vsub.f32 %v1639_v54, %v726_v17  ;;  %v739_v1 = vsub.f32 %v1622_v42, %v726_v17  ;;  %v720_v57 = vadd.f32 %v716_v10, %v710_v45  ;;  %v711_v51 = vadd.f32 %v707_v43, %v701_v5 }
  0x83   : > { %v678_v27 = vsub.f32 %v1800_v3, %v665_v16  ;;  %v702_v8 = vadd.f32 %v698_v15, %v692_v24  ;;  %v718_v52 = vmul.f32 %v714_v56, %v1817_v25  ;;  %v683_v7 = vadd.f32 %v679_v61, %v619_v58 }
  0x84   : > { %1004 = vst [vmem:[%s1746_s17 + $0x60] sm:$0xff] %v730_v12  ;;  %v743_v50 = vmul.f32 %v739_v1, %v739_v1  ;;  %v727_v33 = vadd.f32 %v725_v4, %v720_v57  ;;  %v721_v40 = vadd.f32 %v717_v22, %v711_v51  ;;  %v684_v54 = vadd.f32 %v680_v9, %v620_v38 }
  0x85   : > { %v712_v42 = vadd.f32 %v708_v21, %v702_v8  ;;  %v622_v63 = vadd.f32 %v618_v28, %v1906_v35  ;;  %v685_v13 = vadd.f32 %v681_v49, %v621_v11  ;;  %v682_v32 = vmul.f32 %v678_v27, %v678_v27 }
  0x86   : > { %v731_v59 = vsub.f32 %v1697_v44, %v727_v33  ;;  %v740_v3 = vsub.f32 %v1680_v23, %v727_v33  ;;  %v728_v60 = vadd.f32 %v725_v4, %v721_v40  ;;  %v747_v58 = vadd.f32 %v743_v50, %v683_v7 }
  0x87   : > { %v722_v56 = vadd.f32 %v718_v52, %v712_v42  ;;  %v686_v35 = vadd.f32 %v682_v32, %v622_v63 }
  0x88   : > { %1005 = vst [vmem:[%s1746_s17 + $0x68] sm:$0xff] %v731_v59  ;;  %v744_v20 = vmul.f32 %v740_v3, %v740_v3  ;;  %v732_v55 = vsub.f32 %v1760_v34, %v728_v60  ;;  %v741_v44 = vsub.f32 %v1737_v14, %v728_v60 }
  0x89   : > { %v729_v39 = vadd.f32 %v725_v4, %v722_v56 }
  0x8a   : > { %v748_v38 = vadd.f32 %v744_v20, %v684_v54  ;;  %1006 = vst [vmem:[%s1746_s17 + $0x70] sm:$0xff] %v732_v55  ;;  %v745_v23 = vmul.f32 %v741_v44, %v741_v44 }
  0x8b   : > { %v733_v31 = vsub.f32 %v1817_v25, %v729_v39  ;;  %v742_v37 = vsub.f32 %v1802_v19, %v729_v39 }
  0x8c   : > { %v751_v6 = vadd.f32 %v748_v38, %v747_v58  ;;  %v749_v46 = vadd.f32 %v745_v23, %v685_v13 }
  0x8d   : > { %1007 = vst [vmem:[%s1746_s17 + $0x78] sm:$0xff] %v733_v31  ;;  %v746_v34 = vmul.f32 %v742_v37, %v742_v37 }
  0x8e   : > { %v752_v47 = vadd.f32 %v751_v6, %v749_v46 }
  0x8f   : > { %1267 = shalt.err (!%p1264_p13)
}
  0x90   : > { %s1368_s17 = smov 128   ;;  %s1369_s25 = smov 8   ;;  %v750_v14 = vadd.f32 %v746_v34, %v686_v35 }
  0x91   : > { %1023 = dma.vmem_to_hbm [thread:$0]  (%p1482_p9), %s1962_s18, 2048, %s783_s19, %s762_s15, %s1368_s17, %s1368_s17, %s1369_s25  }
  0x92   : > { %v753_v19 = vadd.f32 %v752_v47, %v750_v14  ;;  %s795_s12 = scalar_lea.hbm %s2023_s8, %s1352_s20  ;;  %s363_s13 = scalar_lea.vmem [#allocation14], %s1533_s5 }
  0x93   : > { %s797_s29 = sshll.u32 %s363_s13, 4  ;;  %s799_s14 = sshll.u32 %s795_s12, 4  ;;  %s798_s29 = int_to_ptr.vmem [resolvable:$true] %s797_s29  ;;  %s800_s14 = int_to_ptr.hbm [resolvable:$true] %s799_s14 }
  0x94   : > { %v754_v25 = vrot.slane %v753_v19, 4  ;;  %s767_s26 = scalar_lea.sflag [#allocation15], %s1533_s5  ;;  %s1282_s28 = sshra.s32 %s800_s14, 4  ;;  %s1283_s28 = int_to_ptr.hbm [resolvable:$true] %s1282_s28 }
  0x95   : > { %s1284_s27 = scalar_lea.hbm %s1283_s28, 1  ;;  %s1288_s20 = scalar_lea.hbm %s2023_s8, 2 }
  0x96   : > { %v755_v53 = vadd.f32 %v754_v25, %v753_v19  ;;  %p1285_p0 = scmp.ne.s32.totalorder %s1283_s28, %s1284_s27  ;;  %p1289_p3 = scmp.lt.s32.totalorder %s1283_s28, %s2023_s8 }
  0x97   : > { %p1290_p4 = scmp.lt.s32.totalorder %s1288_s20, %s1284_s27 }
  0x98   : > { %v756_v16 = vrot.slane %v755_v53, 2  ;;  %p1286_p1 = pnand %p1285_p0, %p1482_p9 }
  0x99   : > { %p1291_p5 = por %p1290_p4, %p1289_p3 }
  0x9a   : > { %v757_v11 = vadd.f32 %v756_v16, %v755_v53  ;;  %p1287_p2 = pneg %p1286_p1 }
  0x9c   : > { %v758_v18 = vrot.slane %v757_v11, 1  ;;  %p1292_p6 = pnand %p1291_p5, %p1287_p2 }
  0x9e   : > { %v759_v62 = vadd.f32 %v758_v18, %v757_v11 }
  0xa0   : > { %760 = vst [vmem:[%s363_s13] sm:$0x1] %v759_v62 }
  0xa1   : > { %1295 = shalt.err (!%p1292_p6)
}
  0xa2   : > { %1024 = dma.vmem_to_hbm [thread:$0]  (%p1482_p9), %s798_s29, 16, %s800_s14, %s767_s26  }
  0xa3 PF: > { %s2048_s0 = sld [smem:[#allocation23_spill]]  ;;  %s811_s24 = sand.u32 1, %s1340_s1  }
  0xa4   : > { %p1038_p7 = pnand %p965_p12, %p1489_p11  ;;  %s812_s21 = scalar_lea.sflag [#allocation9], %s811_s24 }
  0xa6   : > { %p1039_p8 = pneg %p1038_p7 }
  0xa8   : > { %1331 = dma.done.wait (%p1039_p8), %s812_s21, 2048  }
  0xa9   : > { %1333 = vsyncadd (%p1039_p8), %s812_s21, 4294965248  ;;  %s822_s11 = scalar_lea.sflag [#allocation15], %s811_s24 }
  0xaa   : > { %1335 = dma.done.wait (%p1039_p8), %s822_s11, 16  }
  0xab   : > { %1337 = vsyncadd (%p1039_p8), %s822_s11, 4294967280  ;;  %s54_s22 = sadd.s32 1, %s2048_s0   ;;  %s2049_s30 = sld [smem:[#allocation21_spill]] }
  0xac   : > { %p51_p10 = scmp.ge.s32.totalorder %s54_s22, 4   ;;  %s2050_s3 = sld [smem:[#allocation25_spill]] }
  0xad   : > { %s2051_s20 = sld [smem:[#allocation22_spill]]  ;;  %s2053_s1 = smov %s1344_s2 }
  0xae   : > { %s2052_s21 = sld [smem:[#allocation24_spill]]  ;;  %53 = sbr.rel (!%p51_p10) target bundleno = 22 (0x16), region = 121 }
  0xb1   : > { %s2054_s2 = smov %s2049_s30 }
  0xb3   :  { %827 = vsyncpa [#allocation8], 1 }
  0xb4   :  { %829 = vsyncpa [#allocation8 + $0x1], 1 }
  0xb5   :  { %830 = vsyncpa [#allocation11], 1 }
  0xb6   :  { %832 = vsyncpa [#allocation11 + $0x1], 1 }
  0xb7   :  { %833 = vsyncpa [#allocation9], 1 }
  0xb8   :  { %835 = vsyncpa [#allocation9 + $0x1], 1 }
  0xb9   :  { %836 = vsyncpa [#allocation15], 1 }
  0xba   :  { %838 = vsyncpa [#allocation15 + $0x1], 1 }

</bundles_post_ra>
